<compile_context>
chip_gen: v7x
topology: tpu7x:2x2x1
jax: 0.10.0
libtpu: 0.0.40
codegen_flags: <defaults>
</compile_context>

<pallas_src>
import jax
import jax.numpy as jnp
import numpy as np
from jax.experimental import pallas as pl
from jax.experimental.pallas import tpu as pltpu

INPUT_SIZE = 272
OUTPUT_SIZE = 382
HIDDEN_SIZE = 50
NEG_SLOPE = 0.01          # nn.LeakyReLU default
TILE_B_MAX = 512          # max batch-tile rows (fits comfortably in VMEM
                          # on v5e/v6e/v7x with double-buffering)


def _round_up(x, m):
    return ((x + m - 1) // m) * m


def _cdiv(a, b):
    return -(-a // b)


HID_P = _round_up(HIDDEN_SIZE, 128)   # 128 (lane-aligned hidden width)


def _leaky_relu(x):
    return jnp.where(x >= 0, x, NEG_SLOPE * x)


def dqn_kernel(x_ref, w1_ref, b1_ref, wh_ref, bh_ref, w6_ref, b6_ref, o_ref):
    # Fused 6-layer MLP on one batch tile.  bf16 operands, f32 accumulation.
    h = jnp.dot(x_ref[...].astype(jnp.bfloat16), w1_ref[...],
                preferred_element_type=jnp.float32) + b1_ref[...]
    h = _leaky_relu(h)
    for k in range(4):                      # fc2 .. fc5 (static unroll)
        h = jnp.dot(h.astype(jnp.bfloat16), wh_ref[k],
                    preferred_element_type=jnp.float32) + bh_ref[k]
        h = _leaky_relu(h)
    o_ref[...] = (jnp.dot(h.astype(jnp.bfloat16), w6_ref[...],
                          preferred_element_type=jnp.float32)
                  + b6_ref[...]).astype(o_ref.dtype)


@jax.jit
def dqn_forward(x, params):
    """x: [batch, INPUT_SIZE] f32. params: dict from init_params()."""
    batch = x.shape[0]

    if batch <= TILE_B_MAX:
        # Latency path: one grid step, block == full array -> no padding.
        tile_b = batch
        batch_p = batch
    else:
        # Throughput path: balanced tiles, minimal ragged-remainder padding.
        num_tiles = _cdiv(batch, TILE_B_MAX)
        tile_b = _round_up(_cdiv(batch, num_tiles), 8)
        batch_p = tile_b * num_tiles

    if batch_p != batch:   # only the ragged remainder is padded (static check)
        x = jnp.pad(x, ((0, batch_p - batch), (0, 0)))

    grid = (batch_p // tile_b,)

    in_specs = [
        pl.BlockSpec((tile_b, INPUT_SIZE), lambda i: (i, 0)),      # x tile
        pl.BlockSpec((INPUT_SIZE, HID_P), lambda i: (0, 0)),       # w1
        pl.BlockSpec((1, HID_P), lambda i: (0, 0)),                # b1
        pl.BlockSpec((4, HID_P, HID_P), lambda i: (0, 0, 0)),      # w2..w5
        pl.BlockSpec((4, 1, HID_P), lambda i: (0, 0, 0)),          # b2..b5
        pl.BlockSpec((HID_P, OUTPUT_SIZE), lambda i: (0, 0)),      # w6
        pl.BlockSpec((1, OUTPUT_SIZE), lambda i: (0, 0)),          # b6
    ]
    out_spec = pl.BlockSpec((tile_b, OUTPUT_SIZE), lambda i: (i, 0))

    out = pl.pallas_call(
        dqn_kernel,
        out_shape=jax.ShapeDtypeStruct((batch_p, OUTPUT_SIZE), jnp.float32),
        grid=grid,
        in_specs=in_specs,
        out_specs=out_spec,
        compiler_params=pltpu.CompilerParams(
            dimension_semantics=("parallel",),
            vmem_limit_bytes=32 << 20,
        ),
    )(x, params["w1"], params["b1"], params["wh"], params["bh"],
      params["w6"], params["b6"])

    if batch_p != batch:
        out = out[:batch]
    return out


def init_params(key):
    """Matches the module's explicit init: kaiming_uniform_(a=0, fan_in,
    nonlinearity='relu') weights, zero biases.  Weights stored transposed
    ([in, out]), zero-padded on the hidden axis to 128 lanes, cast to bf16."""
    dims = [(INPUT_SIZE, HIDDEN_SIZE)] + [(HIDDEN_SIZE, HIDDEN_SIZE)] * 4 \
        + [(HIDDEN_SIZE, OUTPUT_SIZE)]
    pads = [(INPUT_SIZE, HID_P)] + [(HID_P, HID_P)] * 4 + [(HID_P, OUTPUT_SIZE)]

    ws, bs = [], []
    for (fan_in, fan_out), (ip, op) in zip(dims, pads):
        key, wk = jax.random.split(key)
        gain = float(np.sqrt(2.0))                    # nonlinearity='relu'
        bound = gain * float(np.sqrt(3.0 / fan_in))   # kaiming_uniform_
        w = jax.random.uniform(wk, (fan_in, fan_out), jnp.float32,
                               minval=-bound, maxval=bound)
        w_p = jnp.zeros((ip, op), jnp.float32).at[:fan_in, :fan_out].set(w)
        ws.append(w_p.astype(jnp.bfloat16))
        bs.append(jnp.zeros((1, op), jnp.float32))    # nn.init.zeros_

    return {
        "w1": ws[0], "b1": bs[0],
        "wh": jnp.stack(ws[1:5], axis=0),             # (4, 128, 128) bf16
        "bh": jnp.stack(bs[1:5], axis=0),             # (4, 1, 128)  f32
        "w6": ws[5], "b6": bs[5],
    }


def dqn_forward_ref(x, params):
    """Pure-JAX reference with identical bf16/f32-accum arithmetic."""
    w_list = [params["w1"]] + [params["wh"][k] for k in range(4)] + [params["w6"]]
    b_list = [params["b1"]] + [params["bh"][k] for k in range(4)] + [params["b6"]]
    h = x
    for li, (w, b) in enumerate(zip(w_list, b_list)):
        h = jnp.dot(h.astype(jnp.bfloat16), w,
                    preferred_element_type=jnp.float32) + b
        if li < 5:
            h = jnp.where(h >= 0, h, NEG_SLOPE * h)
    return h


if __name__ == "__main__":
    key = jax.random.PRNGKey(0)
    pkey, xkey1, xkey2 = jax.random.split(key, 3)
    params = init_params(pkey)

    # Small-batch (latency) path: single grid step, no batch padding.
    batch = 2
    x = jax.random.normal(xkey1, (batch, INPUT_SIZE), jnp.float32)
    out = jax.block_until_ready(dqn_forward(x, params))
    ref = dqn_forward_ref(x, params)
    np.testing.assert_allclose(np.asarray(out), np.asarray(ref),
                               rtol=1e-2, atol=1e-2)
    assert out.shape == (batch, OUTPUT_SIZE)

    # Larger ragged batch: exercises balanced batch tiling + remainder padding.
    batch2 = 1037
    x2 = jax.random.normal(xkey2, (batch2, INPUT_SIZE), jnp.float32)
    out2 = jax.block_until_ready(dqn_forward(x2, params))
    ref2 = dqn_forward_ref(x2, params)
    np.testing.assert_allclose(np.asarray(out2), np.asarray(ref2),
                               rtol=1e-2, atol=1e-2)
    assert out2.shape == (batch2, OUTPUT_SIZE)

    print("KERNEL_OK")
</pallas_src>

<mosaic_0001>
module attributes {stable_mosaic.version = 11 : i64} {
  func.func @dqn_kernel(%arg0: i32, %arg1: memref<2x272xf32, #tpu.memory_space<vmem>>, %arg2: memref<272x128xbf16, #tpu.memory_space<vmem>>, %arg3: memref<1x128xf32, #tpu.memory_space<vmem>>, %arg4: memref<4x128x128xbf16, #tpu.memory_space<vmem>>, %arg5: memref<4x1x128xf32, #tpu.memory_space<vmem>>, %arg6: memref<128x382xbf16, #tpu.memory_space<vmem>>, %arg7: memref<1x382xf32, #tpu.memory_space<vmem>>, %arg8: memref<2x382xf32, #tpu.memory_space<vmem>>) attributes {dimension_semantics = [#tpu.dimension_semantics<parallel>], iteration_bounds = array<i64: 1>, scalar_prefetch = 0 : i64, scratch_operands = 0 : i64, tpu.core_type = #tpu.core_type<tc>, window_params = [{transform_indices = @transform_0, window_bounds = array<i64: 2, 272>}, {pipeline_mode = #tpu.pipeline_mode<synchronous>, transform_indices = @transform_1, window_bounds = array<i64: 272, 128>}, {pipeline_mode = #tpu.pipeline_mode<synchronous>, transform_indices = @transform_2, window_bounds = array<i64: 1, 128>}, {pipeline_mode = #tpu.pipeline_mode<synchronous>, transform_indices = @transform_3, window_bounds = array<i64: 4, 128, 128>}, {pipeline_mode = #tpu.pipeline_mode<synchronous>, transform_indices = @transform_4, window_bounds = array<i64: 4, 1, 128>}, {pipeline_mode = #tpu.pipeline_mode<synchronous>, transform_indices = @transform_5, window_bounds = array<i64: 128, 382>}, {pipeline_mode = #tpu.pipeline_mode<synchronous>, transform_indices = @transform_6, window_bounds = array<i64: 1, 382>}, {transform_indices = @transform_7, window_bounds = array<i64: 2, 382>}]} {
    %c0 = arith.constant 0 : index
    %c0_0 = arith.constant 0 : index
    %0 = vector.load %arg1[%c0, %c0_0] : memref<2x272xf32, #tpu.memory_space<vmem>>, vector<2x272xf32>
    %1 = arith.truncf %0 : vector<2x272xf32> to vector<2x272xbf16>
    %c0_1 = arith.constant 0 : index
    %c0_2 = arith.constant 0 : index
    %2 = vector.load %arg2[%c0_1, %c0_2] : memref<272x128xbf16, #tpu.memory_space<vmem>>, vector<272x128xbf16>
    %cst = arith.constant dense<0.000000e+00> : vector<2x128xf32>
    %3 = tpu.matmul %1, %2, %cst {dimension_numbers = #tpu.dot_dimension_numbers<[1], [0], [0], [1], [0, 0, 1, 1], [], []>} : vector<2x272xbf16>, vector<272x128xbf16>, vector<2x128xf32> -> vector<2x128xf32>
    %c0_3 = arith.constant 0 : index
    %c0_4 = arith.constant 0 : index
    %4 = vector.load %arg3[%c0_3, %c0_4] : memref<1x128xf32, #tpu.memory_space<vmem>>, vector<1x128xf32>
    %5 = vector.broadcast %4 : vector<1x128xf32> to vector<2x128xf32>
    %6 = arith.addf %3, %5 : vector<2x128xf32>
    %cst_5 = arith.constant 0.000000e+00 : f32
    %7 = vector.broadcast %cst_5 : f32 to vector<2x128xf32>
    %8 = arith.cmpf oge, %6, %7 : vector<2x128xf32>
    %cst_6 = arith.constant 0.00999999977 : f32
    %9 = vector.broadcast %cst_6 : f32 to vector<2x128xf32>
    %10 = arith.mulf %9, %6 : vector<2x128xf32>
    %11 = arith.select %8, %6, %10 : vector<2x128xi1>, vector<2x128xf32>
    %12 = arith.truncf %11 : vector<2x128xf32> to vector<2x128xbf16>
    %c0_7 = arith.constant 0 : index
    %c0_8 = arith.constant 0 : index
    %c0_9 = arith.constant 0 : index
    %13 = vector.load %arg4[%c0_7, %c0_8, %c0_9] : memref<4x128x128xbf16, #tpu.memory_space<vmem>>, vector<1x128x128xbf16>
    %14 = vector.shape_cast %13 : vector<1x128x128xbf16> to vector<128x128xbf16>
    %cst_10 = arith.constant dense<0.000000e+00> : vector<2x128xf32>
    %15 = tpu.matmul %12, %14, %cst_10 {dimension_numbers = #tpu.dot_dimension_numbers<[1], [0], [0], [1], [0, 0, 1, 1], [], []>} : vector<2x128xbf16>, vector<128x128xbf16>, vector<2x128xf32> -> vector<2x128xf32>
    %c0_11 = arith.constant 0 : index
    %c0_12 = arith.constant 0 : index
    %c0_13 = arith.constant 0 : index
    %16 = vector.load %arg5[%c0_11, %c0_12, %c0_13] : memref<4x1x128xf32, #tpu.memory_space<vmem>>, vector<1x1x128xf32>
    %17 = vector.shape_cast %16 : vector<1x1x128xf32> to vector<1x128xf32>
    %18 = vector.broadcast %17 : vector<1x128xf32> to vector<2x128xf32>
    %19 = arith.addf %15, %18 : vector<2x128xf32>
    %cst_14 = arith.constant 0.000000e+00 : f32
    %20 = vector.broadcast %cst_14 : f32 to vector<2x128xf32>
    %21 = arith.cmpf oge, %19, %20 : vector<2x128xf32>
    %cst_15 = arith.constant 0.00999999977 : f32
    %22 = vector.broadcast %cst_15 : f32 to vector<2x128xf32>
    %23 = arith.mulf %22, %19 : vector<2x128xf32>
    %24 = arith.select %21, %19, %23 : vector<2x128xi1>, vector<2x128xf32>
    %25 = arith.truncf %24 : vector<2x128xf32> to vector<2x128xbf16>
    %c1 = arith.constant 1 : index
    %c0_16 = arith.constant 0 : index
    %c0_17 = arith.constant 0 : index
    %26 = vector.load %arg4[%c1, %c0_16, %c0_17] : memref<4x128x128xbf16, #tpu.memory_space<vmem>>, vector<1x128x128xbf16>
    %27 = vector.shape_cast %26 : vector<1x128x128xbf16> to vector<128x128xbf16>
    %cst_18 = arith.constant dense<0.000000e+00> : vector<2x128xf32>
    %28 = tpu.matmul %25, %27, %cst_18 {dimension_numbers = #tpu.dot_dimension_numbers<[1], [0], [0], [1], [0, 0, 1, 1], [], []>} : vector<2x128xbf16>, vector<128x128xbf16>, vector<2x128xf32> -> vector<2x128xf32>
    %c1_19 = arith.constant 1 : index
    %c0_20 = arith.constant 0 : index
    %c0_21 = arith.constant 0 : index
    %29 = vector.load %arg5[%c1_19, %c0_20, %c0_21] : memref<4x1x128xf32, #tpu.memory_space<vmem>>, vector<1x1x128xf32>
    %30 = vector.shape_cast %29 : vector<1x1x128xf32> to vector<1x128xf32>
    %31 = vector.broadcast %30 : vector<1x128xf32> to vector<2x128xf32>
    %32 = arith.addf %28, %31 : vector<2x128xf32>
    %cst_22 = arith.constant 0.000000e+00 : f32
    %33 = vector.broadcast %cst_22 : f32 to vector<2x128xf32>
    %34 = arith.cmpf oge, %32, %33 : vector<2x128xf32>
    %cst_23 = arith.constant 0.00999999977 : f32
    %35 = vector.broadcast %cst_23 : f32 to vector<2x128xf32>
    %36 = arith.mulf %35, %32 : vector<2x128xf32>
    %37 = arith.select %34, %32, %36 : vector<2x128xi1>, vector<2x128xf32>
    %38 = arith.truncf %37 : vector<2x128xf32> to vector<2x128xbf16>
    %c2 = arith.constant 2 : index
    %c0_24 = arith.constant 0 : index
    %c0_25 = arith.constant 0 : index
    %39 = vector.load %arg4[%c2, %c0_24, %c0_25] : memref<4x128x128xbf16, #tpu.memory_space<vmem>>, vector<1x128x128xbf16>
    %40 = vector.shape_cast %39 : vector<1x128x128xbf16> to vector<128x128xbf16>
    %cst_26 = arith.constant dense<0.000000e+00> : vector<2x128xf32>
    %41 = tpu.matmul %38, %40, %cst_26 {dimension_numbers = #tpu.dot_dimension_numbers<[1], [0], [0], [1], [0, 0, 1, 1], [], []>} : vector<2x128xbf16>, vector<128x128xbf16>, vector<2x128xf32> -> vector<2x128xf32>
    %c2_27 = arith.constant 2 : index
    %c0_28 = arith.constant 0 : index
    %c0_29 = arith.constant 0 : index
    %42 = vector.load %arg5[%c2_27, %c0_28, %c0_29] : memref<4x1x128xf32, #tpu.memory_space<vmem>>, vector<1x1x128xf32>
    %43 = vector.shape_cast %42 : vector<1x1x128xf32> to vector<1x128xf32>
    %44 = vector.broadcast %43 : vector<1x128xf32> to vector<2x128xf32>
    %45 = arith.addf %41, %44 : vector<2x128xf32>
    %cst_30 = arith.constant 0.000000e+00 : f32
    %46 = vector.broadcast %cst_30 : f32 to vector<2x128xf32>
    %47 = arith.cmpf oge, %45, %46 : vector<2x128xf32>
    %cst_31 = arith.constant 0.00999999977 : f32
    %48 = vector.broadcast %cst_31 : f32 to vector<2x128xf32>
    %49 = arith.mulf %48, %45 : vector<2x128xf32>
    %50 = arith.select %47, %45, %49 : vector<2x128xi1>, vector<2x128xf32>
    %51 = arith.truncf %50 : vector<2x128xf32> to vector<2x128xbf16>
    %c3 = arith.constant 3 : index
    %c0_32 = arith.constant 0 : index
    %c0_33 = arith.constant 0 : index
    %52 = vector.load %arg4[%c3, %c0_32, %c0_33] : memref<4x128x128xbf16, #tpu.memory_space<vmem>>, vector<1x128x128xbf16>
    %53 = vector.shape_cast %52 : vector<1x128x128xbf16> to vector<128x128xbf16>
    %cst_34 = arith.constant dense<0.000000e+00> : vector<2x128xf32>
    %54 = tpu.matmul %51, %53, %cst_34 {dimension_numbers = #tpu.dot_dimension_numbers<[1], [0], [0], [1], [0, 0, 1, 1], [], []>} : vector<2x128xbf16>, vector<128x128xbf16>, vector<2x128xf32> -> vector<2x128xf32>
    %c3_35 = arith.constant 3 : index
    %c0_36 = arith.constant 0 : index
    %c0_37 = arith.constant 0 : index
    %55 = vector.load %arg5[%c3_35, %c0_36, %c0_37] : memref<4x1x128xf32, #tpu.memory_space<vmem>>, vector<1x1x128xf32>
    %56 = vector.shape_cast %55 : vector<1x1x128xf32> to vector<1x128xf32>
    %57 = vector.broadcast %56 : vector<1x128xf32> to vector<2x128xf32>
    %58 = arith.addf %54, %57 : vector<2x128xf32>
    %cst_38 = arith.constant 0.000000e+00 : f32
    %59 = vector.broadcast %cst_38 : f32 to vector<2x128xf32>
    %60 = arith.cmpf oge, %58, %59 : vector<2x128xf32>
    %cst_39 = arith.constant 0.00999999977 : f32
    %61 = vector.broadcast %cst_39 : f32 to vector<2x128xf32>
    %62 = arith.mulf %61, %58 : vector<2x128xf32>
    %63 = arith.select %60, %58, %62 : vector<2x128xi1>, vector<2x128xf32>
    %64 = arith.truncf %63 : vector<2x128xf32> to vector<2x128xbf16>
    %c0_40 = arith.constant 0 : index
    %c0_41 = arith.constant 0 : index
    %65 = vector.load %arg6[%c0_40, %c0_41] : memref<128x382xbf16, #tpu.memory_space<vmem>>, vector<128x382xbf16>
    %cst_42 = arith.constant dense<0.000000e+00> : vector<2x382xf32>
    %66 = tpu.matmul %64, %65, %cst_42 {dimension_numbers = #tpu.dot_dimension_numbers<[1], [0], [0], [1], [0, 0, 1, 1], [], []>} : vector<2x128xbf16>, vector<128x382xbf16>, vector<2x382xf32> -> vector<2x382xf32>
    %c0_43 = arith.constant 0 : index
    %c0_44 = arith.constant 0 : index
    %67 = vector.load %arg7[%c0_43, %c0_44] : memref<1x382xf32, #tpu.memory_space<vmem>>, vector<1x382xf32>
    %68 = vector.broadcast %67 : vector<1x382xf32> to vector<2x382xf32>
    %69 = arith.addf %66, %68 : vector<2x382xf32>
    %c0_45 = arith.constant 0 : index
    %c0_46 = arith.constant 0 : index
    %70 = vector.load %arg8[%c0_45, %c0_46] : memref<2x382xf32, #tpu.memory_space<vmem>>, vector<2x382xf32>
    tpu.vector_store %arg8[%c0_45, %c0_46], %69 {strides = array<i32>} : memref<2x382xf32, #tpu.memory_space<vmem>>, vector<2x382xf32>,
    return
  }
  func.func @transform_0(%arg0: i32) -> (i32, i32) {
    %c0_i32 = arith.constant 0 : i32
    %c0_i32_0 = arith.constant 0 : i32
    return %arg0, %c0_i32 : i32, i32
  }
  func.func @transform_1(%arg0: i32) -> (i32, i32) {
    %c0_i32 = arith.constant 0 : i32
    %c0_i32_0 = arith.constant 0 : i32
    %c0_i32_1 = arith.constant 0 : i32
    return %c0_i32, %c0_i32_0 : i32, i32
  }
  func.func @transform_2(%arg0: i32) -> (i32, i32) {
    %c0_i32 = arith.constant 0 : i32
    %c0_i32_0 = arith.constant 0 : i32
    %c0_i32_1 = arith.constant 0 : i32
    return %c0_i32, %c0_i32_0 : i32, i32
  }
  func.func @transform_3(%arg0: i32) -> (i32, i32, i32) {
    %c0_i32 = arith.constant 0 : i32
    %c0_i32_0 = arith.constant 0 : i32
    %c0_i32_1 = arith.constant 0 : i32
    %c0_i32_2 = arith.constant 0 : i32
    return %c0_i32, %c0_i32_0, %c0_i32_1 : i32, i32, i32
  }
  func.func @transform_4(%arg0: i32) -> (i32, i32, i32) {
    %c0_i32 = arith.constant 0 : i32
    %c0_i32_0 = arith.constant 0 : i32
    %c0_i32_1 = arith.constant 0 : i32
    %c0_i32_2 = arith.constant 0 : i32
    return %c0_i32, %c0_i32_0, %c0_i32_1 : i32, i32, i32
  }
  func.func @transform_5(%arg0: i32) -> (i32, i32) {
    %c0_i32 = arith.constant 0 : i32
    %c0_i32_0 = arith.constant 0 : i32
    %c0_i32_1 = arith.constant 0 : i32
    return %c0_i32, %c0_i32_0 : i32, i32
  }
  func.func @transform_6(%arg0: i32) -> (i32, i32) {
    %c0_i32 = arith.constant 0 : i32
    %c0_i32_0 = arith.constant 0 : i32
    %c0_i32_1 = arith.constant 0 : i32
    return %c0_i32, %c0_i32_0 : i32, i32
  }
  func.func @transform_7(%arg0: i32) -> (i32, i32) {
    %c0_i32 = arith.constant 0 : i32
    %c0_i32_0 = arith.constant 0 : i32
    return %arg0, %c0_i32 : i32, i32
  }
}

</mosaic_0001>

<bundles_post_ra>
// kernel: dqn_forward.1
= control target key start
LH: loop header
LB: loop body
LE: loop exit
PB: predicated region body
PF: predicated region fallthrough
CT: control target
= control target key end

     0   :  { %12 = vsyncpa [#allocation3], 0  ;;  %s1813_s0 = inlined_call_operand.hbm [shape: f32[2,272], index: 0, kind: input, shape index: {}]   ;;  %s1814_s1 = inlined_call_operand.hbm [shape: bf16[272,128], index: 1, kind: input, shape index: {}]   ;;  %s1815_s2 = inlined_call_operand.hbm [shape: f32[1,128], index: 2, kind: input, shape index: {}]   ;;  %s1816_s3 = inlined_call_operand.hbm [shape: bf16[4,128,128], index: 3, kind: input, shape index: {}]   ;;  %s1817_s4 = inlined_call_operand.vmem [shape: f32[4,1,128], index: 4, kind: input, shape index: {}]   ;;  %s1818_s5 = inlined_call_operand.hbm [shape: bf16[128,382], index: 5, kind: input, shape index: {}]   ;;  %s1819_s6 = inlined_call_operand.vmem [shape: f32[1,382], index: 6, kind: input, shape index: {}]   ;;  %s1820_s7 = inlined_call_operand.hbm [shape: f32[2,382], index: 7, kind: output, shape index: {}]  }
   0x1   :  { %13 = vsyncpa [#allocation6], 0 }
   0x2   :  { %14 = vsyncpa [#allocation9], 0 }
   0x3   :  { %15 = vsyncpa [#allocation4], 0  ;;  %s1607_s24 = smov [#allocation5]   ;;  %s1467_s28 = scalar_lea.hbm %s1814_s1, 2176 }
   0x4   :  { %s31_s25 = sshll.u32 %s1607_s24, 4  ;;  %p1468_p0 = scmp.ne.s32.totalorder %s1814_s1, %s1467_s28  ;;  %s32_s25 = int_to_ptr.vmem [resolvable:$true] %s31_s25 }
   0x5   :  { %p1471_p1 = scmp.lt.u32.totalorder %s1467_s28, %s1814_s1 }
   0x7   :  { %p1473_p2 = pnand %p1471_p1, %p1468_p0 }
   0x9   :  { %1476 = shalt.err (!%p1473_p2)
}
   0xa   :  { %s1477_s10 = scalar_lea.vmem %s32_s25, 2176  ;;  %p1482_p4 = scmp.lt.s32.totalorder %s32_s25, %s32_s25 }
   0xb   :  { %p1478_p3 = scmp.ne.s32.totalorder %s32_s25, %s1477_s10  ;;  %p1483_p5 = scmp.lt.s32.totalorder %s1477_s10, %s1477_s10 }
   0xd   :  { %p1484_p6 = por %p1483_p5, %p1482_p4 }
   0xf   :  { %p1485_p7 = pnand %p1484_p6, %p1478_p3 }
  0x11   :  { %1488 = shalt.err (!%p1485_p7)
}
  0x12   :  { %s1608_s11 = smov 64   ;;  %s1609_s12 = smov 4  }
  0x13   :  { %37 = dma.hbm_to_vmem [thread:$0]  %s1814_s1, 2176, %s32_s25, [#allocation6], %s1608_s11, %s1608_s11, %s1609_s12  }
  0x14   :  { %s1610_s15 = smov [#allocation8]   ;;  %s1611_s17 = smov [#allocation2]  }
  0x15   :  { %s53_s16 = sshll.u32 %s1610_s15, 4  ;;  %s22_s18 = sshll.u32 %s1611_s17, 4  ;;  %s54_s16 = int_to_ptr.vmem [resolvable:$true] %s53_s16  ;;  %s23_s18 = int_to_ptr.vmem [resolvable:$true] %s22_s18 }
  0x16   :  { %s1489_s21 = scalar_lea.hbm %s1816_s3, 4096 }
  0x17   :  { %p1490_p8 = scmp.ne.s32.totalorder %s1816_s3, %s1489_s21  ;;  %p1493_p9 = scmp.lt.u32.totalorder %s1489_s21, %s1816_s3 }
  0x19   :  { %p1495_p10 = pnand %p1493_p9, %p1490_p8 }
  0x1b   :  { %1498 = shalt.err (!%p1495_p10)
}
  0x1c   :  { %s1499_s1 = scalar_lea.vmem %s54_s16, 4096  ;;  %p1504_p12 = scmp.lt.s32.totalorder %s54_s16, %s54_s16 }
  0x1d   :  { %p1500_p11 = scmp.ne.s32.totalorder %s54_s16, %s1499_s1  ;;  %p1505_p13 = scmp.lt.s32.totalorder %s1499_s1, %s1499_s1 }
  0x1f   :  { %p1506_p0 = por %p1505_p13, %p1504_p12 }
  0x21   :  { %p1507_p1 = pnand %p1506_p0, %p1500_p11 }
  0x23   :  { %1510 = shalt.err (!%p1507_p1)
}
  0x24   :  { %59 = dma.hbm_to_vmem [thread:$0]  %s1816_s3, 4096, %s54_s16, [#allocation9], %s1608_s11, %s1608_s11, %s1609_s12  }
  0x25   :  { %s1511_s30 = scalar_lea.hbm %s1813_s0, 96 }
  0x26   :  { %p1512_p2 = scmp.ne.s32.totalorder %s1813_s0, %s1511_s30  ;;  %p1515_p3 = scmp.lt.u32.totalorder %s1511_s30, %s1813_s0 }
  0x28   :  { %p1517_p4 = pnand %p1515_p3, %p1512_p2 }
  0x2a   :  { %1520 = shalt.err (!%p1517_p4)
}
  0x2b   :  { %s1521_s14 = scalar_lea.vmem %s23_s18, 96  ;;  %p1526_p6 = scmp.lt.s32.totalorder %s23_s18, %s23_s18 }
  0x2c   :  { %p1522_p5 = scmp.ne.s32.totalorder %s23_s18, %s1521_s14  ;;  %p1527_p7 = scmp.lt.s32.totalorder %s1521_s14, %s1521_s14 }
  0x2e   :  { %p1528_p8 = por %p1527_p7, %p1526_p6 }
  0x30   :  { %p1529_p9 = pnand %p1528_p8, %p1522_p5 }
  0x32   :  { %1532 = shalt.err (!%p1529_p9)
}
  0x33   :  { %25 = dma.hbm_to_vmem [thread:$0]  %s1813_s0, 96, %s23_s18, [#allocation3]  }
  0x34   :  { %s1612_s12 = smov [#allocation7]   ;;  %s1613_s16 = smov [#allocation10]  }
  0x35   :  { %s44_s15 = sshll.u32 %s1612_s12, 4  ;;  %s67_s17 = sshll.u32 %s1613_s16, 4  ;;  %s45_s15 = int_to_ptr.vmem [resolvable:$true] %s44_s15  ;;  %s68_s17 = int_to_ptr.vmem [resolvable:$true] %s67_s17 }
  0x36   :  { %s1533_s21 = scalar_lea.hbm %s1815_s2, 16 }
  0x37   :  { %p1534_p10 = scmp.ne.s32.totalorder %s1815_s2, %s1533_s21  ;;  %p1537_p11 = scmp.lt.u32.totalorder %s1533_s21, %s1815_s2 }
  0x39   :  { %p1539_p12 = pnand %p1537_p11, %p1534_p10 }
  0x3b   :  { %1542 = shalt.err (!%p1539_p12)
}
  0x3c   :  { %s1543_s0 = scalar_lea.vmem %s45_s15, 16  ;;  %s1547_s18 = scalar_lea.vmem %s45_s15, 32 }
  0x3d   :  { %p1544_p13 = scmp.ne.s32.totalorder %s45_s15, %s1543_s0  ;;  %p1548_p0 = scmp.lt.s32.totalorder %s45_s15, %s45_s15 }
  0x3e   :  { %p1549_p1 = scmp.lt.s32.totalorder %s1547_s18, %s1543_s0 }
  0x40   :  { %p1550_p2 = por %p1549_p1, %p1548_p0 }
  0x42   :  { %p1551_p3 = pnand %p1550_p2, %p1544_p13 }
  0x44   :  { %1554 = shalt.err (!%p1551_p3)
}
  0x45   :  { %47 = dma.hbm_to_vmem [thread:$0]  %s1815_s2, 16, %s45_s15, [#allocation6]  }
  0x46   :  { %s1555_s29 = scalar_lea.hbm %s1818_s5, 3072 }
  0x47   :  { %p1556_p4 = scmp.ne.s32.totalorder %s1818_s5, %s1555_s29  ;;  %p1559_p5 = scmp.lt.u32.totalorder %s1555_s29, %s1818_s5 }
  0x49   :  { %p1561_p6 = pnand %p1559_p5, %p1556_p4 }
  0x4b   :  { %1564 = shalt.err (!%p1561_p6)
}
  0x4c   :  { %s1565_s13 = scalar_lea.vmem %s68_s17, 3072  ;;  %p1570_p8 = scmp.lt.s32.totalorder %s68_s17, %s68_s17 }
  0x4d   :  { %p1566_p7 = scmp.ne.s32.totalorder %s68_s17, %s1565_s13  ;;  %p1571_p9 = scmp.lt.s32.totalorder %s1565_s13, %s1565_s13 }
  0x4f   :  { %p1572_p10 = por %p1571_p9, %p1570_p8 }
  0x51   :  { %p1573_p11 = pnand %p1572_p10, %p1566_p7 }
  0x53   :  { %1576 = shalt.err (!%p1573_p11)
}
  0x54   :  { %s1614_s2 = smov 192   ;;  %s1615_s14 = smov 12  }
  0x55   :  { %73 = dma.hbm_to_vmem [thread:$0]  %s1818_s5, 3072, %s68_s17, [#allocation9], %s1614_s2, %s1614_s2, %s1615_s14  }
  0x56   :  { %1599 = dma.done.wait [#allocation3], 96  }
  0x57   :  { %1600 = vsyncadd [#allocation3], 4294967200 }
  0x58   :  { %1601 = dma.done.wait [#allocation6], 2192  }
  0x59   :  { %1602 = vsyncadd [#allocation6], 4294965104 }
  0x5a   :  { %1603 = dma.done.wait [#allocation9], 7168  }
  0x5b   :  { %1604 = vsyncadd [#allocation9], 4294960128  ;;  %v1616_v0 = vmov 0.0   ;;  %vm1617_vm0 = vmmov 0   ;;  %v1385_v1 = vld [vmem:[#allocation5 + $0x40] sm:$0xff]   ;;  %v1387_v3 = vld [vmem:[#allocation5 + $0x48] sm:$0xff]   ;;  %v98_v8 = vlaneseq }
  0x5c   :  { %1265 = vmatprep.subr.bf16.mxu1 %v1616_v0  ;;  %1267 = vmatprep.mubr.msk.bf16.mxu1 %vm1617_vm0, %v1616_v0  ;;  %v1386_v2 = vld [vmem:[#allocation5] sm:$0xff]   ;;  %v1388_v4 = vld [vmem:[#allocation5 + $0x8] sm:$0xff]   ;;  %v1389_v5 = vld [vmem:[#allocation5 + $0x50] sm:$0xff]   ;;  %v1618_v6 = vmov 1983009808   ;;  %vm259_vm1 = vcmask 130048  }
  0x5d   :  { %1196 = vmatprep.subr.bf16.mxu0 %v1385_v1  ;;  %v96_v7 = vunpack.c.l.s4 %v1618_v6  ;;  %v1390_v9 = vld [vmem:[#allocation5 + $0x10] sm:$0xff]   ;;  %v1391_v10 = vld [vmem:[#allocation5 + $0x58] sm:$0xff]   ;;  %v1724_v12 = vshrl.u32 %v98_v8, 7  ;;  %v1393_v14 = vld [vmem:[#allocation5 + $0x60] sm:$0xff]   ;;  %vm1091_vm7 = vcmask 1041408   ;;  %vm1092_vm8 = vcmask 1043458  }
  0x5e   :  { %1197 = vmatpush3.bf16.msra.mxu0 %v1386_v2  ;;  %v1392_v13 = vld [vmem:[#allocation5 + $0x18] sm:$0xff]   ;;  %v1394_v16 = vld [vmem:[#allocation5 + $0x20] sm:$0xff]   ;;  %v1395_v17 = vld [vmem:[#allocation5 + $0x68] sm:$0xff]   ;;  %vm1094_vm10 = vcmask 1029124  }
  0x5f   :  { %1198 = vmatprep.subr.bf16.mxu0 %v1387_v3  ;;  %v97_v11 = vunpack.c.0.s8 %v96_v7  ;;  %v92_v18 = vld [vmem:[#allocation2] sm:$0x3f]  ;;  %v1402_v21 = vld [vmem:[#allocation5 + $0x80] sm:$0xff]   ;;  %v1396_v22 = vld [vmem:[#allocation5 + $0x28] sm:$0xff]  }
  0x60   :  { %v94_v19 = vcombine.high %v92_v18, %v92_v18  ;;  %1266 = vmatpush3.bf16.msra.mxu1 %v1402_v21  ;;  %v1397_v25 = vld [vmem:[#allocation5 + $0x70] sm:$0xff]   ;;  %v1399_v30 = vld [vmem:[#allocation5 + $0x78] sm:$0xff]   ;;  %v1406_v35 = vld [vmem:[#allocation8 + $0x18] sm:$0xff]  }
  0x61   :  { %v1727_v15 = vsub.s32 %v97_v11, %v1724_v12  ;;  %1271 = vmatprep.subr.bf16.mxu1 %v1616_v0  ;;  %v1398_v26 = vld [vmem:[#allocation5 + $0x30] sm:$0xff]   ;;  %v1400_v32 = vld [vmem:[#allocation5 + $0x38] sm:$0xff]   ;;  %v1410_v39 = vld [vmem:[#allocation8 + $0x38] sm:$0xff]  }
  0x62   :  { %1199 = vmatpush3.bf16.msra.mxu0 %v1388_v4  ;;  %v1403_v29 = vld [vmem:[#allocation8] sm:$0xff]   ;;  %v1404_v31 = vld [vmem:[#allocation8 + $0x8] sm:$0xff]   ;;  %v1405_v33 = vld [vmem:[#allocation8 + $0x10] sm:$0xff]  }
  0x63   :  { %1200 = vmatprep.subr.bf16.mxu0 %v1389_v5  ;;  %v101_v20 = vrot.slane %v92_v18, %v1727_v15  ;;  %v108_v23 = vrot.slane %v94_v19, %v1727_v15  ;;  %v1407_v36 = vld [vmem:[#allocation8 + $0x20] sm:$0xff]   ;;  %v1408_v37 = vld [vmem:[#allocation8 + $0x28] sm:$0xff]   ;;  %v1409_v38 = vld [vmem:[#allocation8 + $0x30] sm:$0xff]  }
  0x64   :  { %v1411_v40 = vld [vmem:[#allocation8 + $0x40] sm:$0xff]   ;;  %v1412_v41 = vld [vmem:[#allocation8 + $0x48] sm:$0xff]   ;;  %v1413_v42 = vld [vmem:[#allocation8 + $0x50] sm:$0xff]  }
  0x65   :  { %v109_v24 = vcombine.high %v101_v20, %v101_v20  ;;  %v115_v28 = vpack.c.bf16 %v108_v23, %v108_v23  ;;  %v113_v34 = vpack.c.bf16 %v101_v20, %v101_v20  ;;  %v1414_v43 = vld [vmem:[#allocation8 + $0x58] sm:$0xff]   ;;  %v1415_v44 = vld [vmem:[#allocation8 + $0x60] sm:$0xff]   ;;  %v1416_v45 = vld [vmem:[#allocation8 + $0x68] sm:$0xff]  }
  0x66   :  { %1201 = vmatpush3.bf16.msra.mxu0 %v1390_v9  ;;  %v1114_v52 = vld [vmem:[#allocation7] ss:$0 sm:$0xff]  ;;  %v1417_v61 = vld [vmem:[#allocation8 + $0x70] sm:$0xff]   ;;  %v1419_v63 = vld [vmem:[#allocation8 + $0x80] sm:$0xff]  }
  0x67   :  { %1202 = vmatprep.subr.bf16.mxu0 %v1391_v10  ;;  %v114_v27 = vpack.c.bf16 %v109_v24, %v109_v24  ;;  %1268 = vmatmul.mubr.msk.bf16.vlgmr.msra.gmra.mrb[0].mxu1 %vm259_vm1, %v115_v28  ;;  %v1418_v62 = vld [vmem:[#allocation8 + $0x78] sm:$0xff]   ;;  %v1420_v1 = vld [vmem:[#allocation8 + $0x88] sm:$0xff]   ;;  %v1421_v2 = vld [vmem:[#allocation8 + $0x90] sm:$0xff]  }
  0x68   :  { %1272 = vmatpush3.bf16.msra.mxu1 %v1403_v29  ;;  %1287 = vmatprep.mubr.msk.bf16.mxu1 %vm1617_vm0, %v1616_v0  ;;  %v1422_v3 = vld [vmem:[#allocation8 + $0x98] sm:$0xff]   ;;  %v1423_v4 = vld [vmem:[#allocation8 + $0xa0] sm:$0xff]   ;;  %v1424_v5 = vld [vmem:[#allocation8 + $0xa8] sm:$0xff]  }
  0x69   :  { %295 = vmatprep.mubr.bf16.mxu0 %v114_v27  ;;  %1273 = vmatprep.subr.bf16.mxu1 %v1616_v0  ;;  %v1133_v6 = vld [vmem:[%s1817_s4] ss:$0 sm:$0xff]  ;;  %v1426_v18 = vld [vmem:[#allocation8 + $0xb8] sm:$0xff]   ;;  %v1427_v19 = vld [vmem:[#allocation8 + $0xc0] sm:$0xff]  }
  0x6a   :  { %1203 = vmatpush3.bf16.msra.mxu0 %v1392_v13  ;;  %v1428_v20 = vld [vmem:[#allocation8 + $0xc8] sm:$0xff]   ;;  %v1429_v21 = vld [vmem:[#allocation8 + $0xd0] sm:$0xff]   ;;  %v1431_v23 = vld [vmem:[#allocation8 + $0xe0] sm:$0xff]  }
  0x6b   :  { %1204 = vmatprep.subr.bf16.mxu0 %v1393_v14  ;;  %v1432_v24 = vld [vmem:[#allocation8 + $0xe8] sm:$0xff]   ;;  %vm1093_vm9 = vmor %vm1092_vm8, %vm1091_vm7 }
  0x6c   :  { %1274 = vmatpush3.bf16.msra.mxu1 %v1404_v31  ;;  %vm1095_vm11 = vmor %vm1094_vm10, %vm1093_vm9 }
  0x6d   :  { %1275 = vmatprep.subr.bf16.mxu1 %v1616_v0 }
  0x6e   :  { %1205 = vmatpush3.bf16.msra.mxu0 %v1394_v16 }
  0x6f   :  { %1206 = vmatprep.subr.bf16.mxu0 %v1395_v17  ;;  %v1425_v17 = vld [vmem:[#allocation8 + $0xb0] sm:$0xff]  }
  0x70   :  { %1276 = vmatpush3.bf16.msra.mxu1 %v1405_v33 }
  0x71   :  { %1277 = vmatprep.subr.bf16.mxu1 %v1616_v0 }
  0x72   :  { %1207 = vmatpush3.bf16.msra.mxu0 %v1396_v22  ;;  %v1430_v22 = vld [vmem:[#allocation8 + $0xd8] sm:$0xff]  }
  0x73   :  { %1208 = vmatprep.subr.bf16.mxu0 %v1397_v25  ;;  %v1143_v25 = vld [vmem:[%s1817_s4 + $0x1] ss:$0 sm:$0xff] }
  0x74   :  { %1278 = vmatpush3.bf16.msra.mxu1 %v1406_v35  ;;  %v1434_v35 = vld [vmem:[#allocation8 + $0xf8] sm:$0xff]  }
  0x75   :  { %1279 = vmatprep.subr.bf16.mxu1 %v1616_v0 }
  0x76   :  { %1209 = vmatpush3.bf16.msra.mxu0 %v1398_v26 }
  0x77   :  { %1210 = vmatprep.subr.bf16.mxu0 %v1399_v30 }
  0x78   :  { %1280 = vmatpush3.bf16.msra.mxu1 %v1407_v36  ;;  %v1435_v36 = vld [vmem:[#allocation10] ss:$12 sps:$4 sm:$0xff]  }
  0x79   :  { %1281 = vmatprep.subr.bf16.mxu1 %v1616_v0 }
  0x7a   :  { %1211 = vmatpush3.bf16.msra.mxu0 %v1400_v32 }
  0x7b   :  { %1291 = vmatprep.subr.bf16.mxu0 %v1616_v0 }
  0x7c   :  { %1282 = vmatpush3.bf16.msra.mxu1 %v1408_v37  ;;  %v1437_v37 = vld [vmem:[#allocation10 + $0x4] ss:$12 sps:$4 sm:$0xff]  }
  0x7d   :  { %296 = vmatmul.mubr.bf16.vlgmr.msra.gmra.mrb[0].mxu0 %v113_v34  ;;  %1283 = vmatprep.subr.bf16.mxu1 %v1616_v0  ;;  %v1433_v34 = vld [vmem:[#allocation8 + $0xf0] sm:$0xff]  }
  0x7e   :  { %1307 = vmatprep.mubr.msk.bf16.mxu0 %vm1617_vm0, %v1616_v0  ;;  %1292 = vmatpush3.bf16.msra.mxu0 %v1411_v40  ;;  %v1445_v40 = vld [vmem:[#allocation10 + $0x34] ss:$12 sps:$4 sm:$0xff]  }
  0x7f   :  { %1293 = vmatprep.subr.bf16.mxu0 %v1616_v0 }
  0x80   :  { %1284 = vmatpush3.bf16.msra.mxu1 %v1409_v38  ;;  %v1441_v38 = vld [vmem:[#allocation10 + $0x1c] ss:$12 sps:$4 sm:$0xff]  }
  0x81   :  { %1285 = vmatprep.subr.bf16.mxu1 %v1616_v0 }
  0x82   :  { %1294 = vmatpush3.bf16.msra.mxu0 %v1412_v41  ;;  %v1443_v41 = vld [vmem:[#allocation10 + $0x30] ss:$12 sps:$4 sm:$0xff]  }
  0x83   :  { %1295 = vmatprep.subr.bf16.mxu0 %v1616_v0 }
  0x84   :  { %1286 = vmatpush3.bf16.msra.mxu1 %v1410_v39  ;;  %v1439_v39 = vld [vmem:[#allocation10 + $0x18] ss:$12 sps:$4 sm:$0xff]  }
  0x85   :  { %1311 = vmatprep.subr.bf16.mxu1 %v1616_v0 }
  0x86   :  { %1296 = vmatpush3.bf16.msra.mxu0 %v1413_v42  ;;  %v1449_v42 = vld [vmem:[#allocation10 + $0x4c] ss:$12 sps:$4 sm:$0xff]  }
  0x87   :  { %1297 = vmatprep.subr.bf16.mxu0 %v1616_v0 }
  0x8a   :  { %1298 = vmatpush3.bf16.msra.mxu0 %v1414_v43  ;;  %v1447_v43 = vld [vmem:[#allocation10 + $0x48] ss:$12 sps:$4 sm:$0xff]  }
  0x8b   :  { %1299 = vmatprep.subr.bf16.mxu0 %v1616_v0 }
  0x8e   :  { %1300 = vmatpush3.bf16.msra.mxu0 %v1415_v44  ;;  %v1453_v44 = vld [vmem:[#allocation10 + $0x64] ss:$12 sps:$4 sm:$0xff]  }
  0x8f   :  { %1301 = vmatprep.subr.bf16.mxu0 %v1616_v0 }
  0x92   :  { %1302 = vmatpush3.bf16.msra.mxu0 %v1416_v45  ;;  %v1451_v45 = vld [vmem:[#allocation10 + $0x60] ss:$12 sps:$4 sm:$0xff]  }
  0x93   :  { %1303 = vmatprep.subr.bf16.mxu0 %v1616_v0 }
  0x96   :  { %1304 = vmatpush3.bf16.msra.mxu0 %v1417_v61  ;;  %v1454_v61 = vld [vmem:[#allocation10 + $0x68] ss:$12 sps:$4 sm:$0xff]  }
  0x97   :  { %1305 = vmatprep.subr.bf16.mxu0 %v1616_v0 }
  0x9a   :  { %1306 = vmatpush3.bf16.msra.mxu0 %v1418_v62  ;;  %v1458_v62 = vld [vmem:[#allocation10 + $0x80] ss:$12 sps:$4 sm:$0xff]  }
  0x9b   :  { %1331 = vmatprep.subr.bf16.mxu0 %v1616_v0 }
 0x13a   :  { %v337_v46 = vpop.f32.mrb[0].mxu1 }
 0x13b   :  { %v1269_v47 = vpop.f32.mrb[1].mxu1 }
 0x13c   :  { %v340_v48 = vpop.f32.mrb[2].mxu1  ;;  %v1455_v47 = vld [vmem:[#allocation10 + $0x78] ss:$12 sps:$4 sm:$0xff]  }
 0x13d   :  { %v1270_v49 = vpop.f32.mrb[3].mxu1  ;;  %v1153_v48 = vld [vmem:[%s1817_s4 + $0x2] ss:$0 sm:$0xff] }
 0x150   :  { %v1212_v50 = vpop.f32.mrb[0].mxu0 }
 0x151   :  { %v1213_v51 = vpop.f32.mrb[1].mxu0 }
 0x152   :  { %v1214_v53 = vadd.f32 %v1213_v51, %v1212_v50  ;;  %v1215_v54 = vpop.f32.mrb[2].mxu0 }
 0x153   :  { %v1216_v55 = vpop.f32.mrb[3].mxu0 }
 0x154   :  { %v298_v56 = vadd.f32 %v1214_v53, %v1114_v52 }
 0x156   :  { %v338_v57 = vadd.f32 %v337_v46, %v298_v56  ;;  %v1457_v46 = vld [vmem:[#allocation10 + $0x7c] ss:$12 sps:$4 sm:$0xff]  }
 0x157   :  { %v1438_v56 = vld [vmem:[#allocation10 + $0x8] ss:$12 sps:$4 sm:$0xff]  }
 0x158   :  { %vm343_vm2 = vcmp.ge.f32.partialorder %v338_v57, 0.0  ;;  %v344_v58 = vmul.f32 0.01, %v338_v57 }
 0x15a   :  { %v345_v59 = vsel %vm343_vm2, %v338_v57, %v344_v58  ;;  %v1442_v58 = vld [vmem:[#allocation10 + $0x20] ss:$12 sps:$4 sm:$0xff]  }
 0x15b   :  { %v346_v60 = vpack.c.bf16 %v345_v59, %v345_v59  ;;  %v1446_v59 = vld [vmem:[#allocation10 + $0x38] ss:$12 sps:$4 sm:$0xff]  }
 0x15d   :  { %1288 = vmatmul.mubr.bf16.vlgmr.msra.gmra.mrb[4].mxu1 %v346_v60  ;;  %v1450_v60 = vld [vmem:[#allocation10 + $0x50] ss:$12 sps:$4 sm:$0xff]  }
 0x15e   :  { %1327 = vmatprep.mubr.msk.bf16.mxu1 %vm1617_vm0, %v1616_v0  ;;  %1312 = vmatpush3.bf16.msra.mxu1 %v1419_v63  ;;  %v1461_v63 = vld [vmem:[#allocation10 + $0x94] ss:$12 sps:$4 sm:$0xff]  }
 0x15f   :  { %1313 = vmatprep.subr.bf16.mxu1 %v1616_v0 }
 0x162   :  { %1314 = vmatpush3.bf16.msra.mxu1 %v1420_v1  ;;  %v1459_v1 = vld [vmem:[#allocation10 + $0x90] ss:$12 sps:$4 sm:$0xff]  }
 0x163   :  { %1315 = vmatprep.subr.bf16.mxu1 %v1616_v0 }
 0x166   :  { %1316 = vmatpush3.bf16.msra.mxu1 %v1421_v2  ;;  %v1462_v2 = vld [vmem:[#allocation10 + $0x98] ss:$12 sps:$4 sm:$0xff]  }
 0x167   :  { %1317 = vmatprep.subr.bf16.mxu1 %v1616_v0 }
 0x16a   :  { %1318 = vmatpush3.bf16.msra.mxu1 %v1422_v3  ;;  %v1465_v3 = vld [vmem:[#allocation10 + $0xac] ss:$12 sps:$4 sm:$0xff]  }
 0x16b   :  { %1319 = vmatprep.subr.bf16.mxu1 %v1616_v0 }
 0x16e   :  { %1320 = vmatpush3.bf16.msra.mxu1 %v1423_v4  ;;  %v1463_v4 = vld [vmem:[#allocation10 + $0xa8] ss:$12 sps:$4 sm:$0xff]  }
 0x16f   :  { %1321 = vmatprep.subr.bf16.mxu1 %v1616_v0 }
 0x172   :  { %1322 = vmatpush3.bf16.msra.mxu1 %v1424_v5  ;;  %v1466_v5 = vld [vmem:[#allocation10 + $0xb0] ss:$12 sps:$4 sm:$0xff]  }
 0x173   :  { %1323 = vmatprep.subr.bf16.mxu1 %v1616_v0 }
 0x176   :  { %1324 = vmatpush3.bf16.msra.mxu1 %v1425_v17  ;;  %v849_v17 = vsub.s32 0, %v1724_v12 }
 0x177   :  { %1325 = vmatprep.subr.bf16.mxu1 %v1616_v0 }
 0x17a   :  { %1326 = vmatpush3.bf16.msra.mxu1 %v1426_v18  ;;  %v845_v18 = vld [vmem:[%s1819_s6] sm:$0x7] }
 0x17b   :  { %990 = vmatprep.subr.bf16.mxu1 %v1437_v37 }
 0x230   :  { %v452_v7 = vpop.f32.mrb[4].mxu1 }
 0x231   :  { %v453_v8 = vadd.f32 %v1133_v6, %v452_v7  ;;  %v1289_v9 = vpop.f32.mrb[5].mxu1  ;;  %v1619_v6 = vmov 0   ;;  %v1163_v7 = vld [vmem:[%s1817_s4 + $0x3] ss:$0 sm:$0xff]  ;;  %s1620_s4 = smov [#allocation11]  }
 0x232   :  { %v455_v10 = vpop.f32.mrb[6].mxu1  ;;  %s1103_s6 = sshll.u32 %s1620_s4, 4  ;;  %s1104_s6 = int_to_ptr.vmem [resolvable:$true] %s1103_s6 }
 0x233   :  { %vm458_vm3 = vcmp.ge.f32.partialorder %v453_v8, 0.0  ;;  %v459_v11 = vmul.f32 0.01, %v453_v8  ;;  %v1290_v13 = vpop.f32.mrb[7].mxu1  ;;  %s1577_s24 = scalar_lea.vmem %s1104_s6, 96  ;;  %p1582_p13 = scmp.lt.s32.totalorder %s1104_s6, %s1104_s6 }
 0x234   :  { %p1578_p12 = scmp.ne.s32.totalorder %s1104_s6, %s1577_s24  ;;  %p1583_p0 = scmp.lt.s32.totalorder %s1577_s24, %s1577_s24 }
 0x235   :  { %v460_v14 = vsel %vm458_vm3, %v453_v8, %v459_v11 }
 0x236   :  { %v461_v16 = vpack.c.bf16 %v460_v14, %v460_v14  ;;  %p1584_p1 = por %p1583_p0, %p1582_p13 }
 0x238   :  { %1308 = vmatmul.mubr.bf16.vlgmr.msra.gmra.mrb[4].mxu0 %v461_v16  ;;  %p1585_p2 = pnand %p1584_p1, %p1578_p12 }
 0x239   :  { %1347 = vmatprep.mubr.msk.bf16.mxu0 %vm1617_vm0, %v1616_v0  ;;  %1332 = vmatpush3.bf16.msra.mxu0 %v1427_v19  ;;  %v857_v19 = vsub.s32 2, %v1724_v12 }
 0x23a   :  { %1333 = vmatprep.subr.bf16.mxu0 %v1616_v0 }
 0x23d   :  { %1334 = vmatpush3.bf16.msra.mxu0 %v1428_v20  ;;  %v853_v20 = vsub.s32 1, %v1724_v12 }
 0x23e   :  { %1335 = vmatprep.subr.bf16.mxu0 %v1616_v0 }
 0x241   :  { %1336 = vmatpush3.bf16.msra.mxu0 %v1429_v21  ;;  %v850_v21 = vrot.slane %v845_v18, %v849_v17 }
 0x242   :  { %1337 = vmatprep.subr.bf16.mxu0 %v1616_v0 }
 0x245   :  { %1338 = vmatpush3.bf16.msra.mxu0 %v1430_v22  ;;  %v858_v22 = vrot.slane %v845_v18, %v857_v19 }
 0x246   :  { %1339 = vmatprep.subr.bf16.mxu0 %v1616_v0 }
 0x249   :  { %1340 = vmatpush3.bf16.msra.mxu0 %v1431_v23  ;;  %v854_v23 = vrot.slane %v845_v18, %v853_v20 }
 0x24a   :  { %1341 = vmatprep.subr.bf16.mxu0 %v1616_v0 }
 0x24d   :  { %1342 = vmatpush3.bf16.msra.mxu0 %v1432_v24 }
 0x24e   :  { %1343 = vmatprep.subr.bf16.mxu0 %v1616_v0 }
 0x251   :  { %1344 = vmatpush3.bf16.msra.mxu0 %v1433_v34 }
 0x252   :  { %1345 = vmatprep.subr.bf16.mxu0 %v1616_v0 }
 0x255   :  { %1346 = vmatpush3.bf16.msra.mxu0 %v1434_v35 }
 0x256   :  { %1351 = vmatprep.subr.bf16.mxu0 %v1616_v0 }
 0x30b   :  { %v569_v26 = vpop.f32.mrb[4].mxu0 }
 0x30c   :  { %v570_v27 = vadd.f32 %v1143_v25, %v569_v26  ;;  %v1309_v28 = vpop.f32.mrb[5].mxu0 }
 0x30d   :  { %v572_v29 = vpop.f32.mrb[6].mxu0 }
 0x30e   :  { %vm575_vm4 = vcmp.ge.f32.partialorder %v570_v27, 0.0  ;;  %v576_v30 = vmul.f32 0.01, %v570_v27  ;;  %v1310_v31 = vpop.f32.mrb[7].mxu0 }
 0x310   :  { %v577_v32 = vsel %vm575_vm4, %v570_v27, %v576_v30 }
 0x311   :  { %v578_v33 = vpack.c.bf16 %v577_v32, %v577_v32 }
 0x313   :  { %1328 = vmatmul.mubr.bf16.vlgmr.msra.gmra.mrb[8].mxu1 %v578_v33 }
 0x314   :  { %991 = vmatpush1.bf16.msra.mxu1 %v1435_v36  ;;  %1022 = vmatprep.mubr.bf16.mxu1 %v1619_v6 }
 0x315   :  { %992 = vmatprep.subr.bf16.mxu1 %v1441_v38 }
 0x318   :  { %993 = vmatpush1.bf16.msra.mxu1 %v1439_v39 }
 0x319   :  { %994 = vmatprep.subr.bf16.mxu1 %v1445_v40 }
 0x31c   :  { %995 = vmatpush1.bf16.msra.mxu1 %v1443_v41 }
 0x31d   :  { %996 = vmatprep.subr.bf16.mxu1 %v1449_v42 }
 0x320   :  { %997 = vmatpush1.bf16.msra.mxu1 %v1447_v43 }
 0x321   :  { %998 = vmatprep.subr.bf16.mxu1 %v1453_v44 }
 0x324   :  { %999 = vmatpush1.bf16.msra.mxu1 %v1451_v45 }
 0x325   :  { %1000 = vmatprep.subr.bf16.mxu1 %v1457_v46 }
 0x328   :  { %1001 = vmatpush1.bf16.msra.mxu1 %v1455_v47 }
 0x329   :  { %1002 = vmatprep.subr.bf16.mxu1 %v1461_v63 }
 0x32c   :  { %1003 = vmatpush1.bf16.msra.mxu1 %v1459_v1 }
 0x32d   :  { %1004 = vmatprep.subr.bf16.mxu1 %v1465_v3 }
 0x330   :  { %1005 = vmatpush1.bf16.msra.mxu1 %v1463_v4 }
 0x3e6   :  { %v686_v49 = vpop.f32.mrb[8].mxu1 }
 0x3e7   :  { %v687_v50 = vadd.f32 %v1153_v48, %v686_v49  ;;  %v1329_v51 = vpop.f32.mrb[9].mxu1 }
 0x3e8   :  { %v689_v52 = vpop.f32.mrb[10].mxu1 }
 0x3e9   :  { %vm692_vm5 = vcmp.ge.f32.partialorder %v687_v50, 0.0  ;;  %v693_v53 = vmul.f32 0.01, %v687_v50  ;;  %v1330_v54 = vpop.f32.mrb[11].mxu1 }
 0x3eb   :  { %v694_v55 = vsel %vm692_vm5, %v687_v50, %v693_v53 }
 0x3ec   :  { %v695_v57 = vpack.c.bf16 %v694_v55, %v694_v55 }
 0x3ee   :  { %1348 = vmatmul.mubr.bf16.vlgmr.msra.gmra.mrb[8].mxu0 %v695_v57 }
 0x3ef   :  { %1352 = vmatpush3.bf16.msra.mxu0 %v1438_v56  ;;  %1367 = vmatprep.mubr.msk.bf16.mxu0 %vm1617_vm0, %v1616_v0 }
 0x3f0   :  { %1353 = vmatprep.subr.bf16.mxu0 %v1616_v0 }
 0x3f3   :  { %1354 = vmatpush3.bf16.msra.mxu0 %v1442_v58 }
 0x3f4   :  { %1355 = vmatprep.subr.bf16.mxu0 %v1616_v0 }
 0x3f7   :  { %1356 = vmatpush3.bf16.msra.mxu0 %v1446_v59 }
 0x3f8   :  { %1357 = vmatprep.subr.bf16.mxu0 %v1616_v0 }
 0x3fb   :  { %1358 = vmatpush3.bf16.msra.mxu0 %v1450_v60 }
 0x3fc   :  { %1359 = vmatprep.subr.bf16.mxu0 %v1616_v0 }
 0x3ff   :  { %1360 = vmatpush3.bf16.msra.mxu0 %v1454_v61 }
 0x400   :  { %1361 = vmatprep.subr.bf16.mxu0 %v1616_v0 }
 0x403   :  { %1362 = vmatpush3.bf16.msra.mxu0 %v1458_v62 }
 0x404   :  { %1363 = vmatprep.subr.bf16.mxu0 %v1616_v0 }
 0x407   :  { %1364 = vmatpush3.bf16.msra.mxu0 %v1462_v2 }
 0x408   :  { %1365 = vmatprep.subr.bf16.mxu0 %v1616_v0 }
 0x40b   :  { %1366 = vmatpush3.bf16.msra.mxu0 %v1466_v5 }
 0x4c1   :  { %v803_v8 = vpop.f32.mrb[8].mxu0 }
 0x4c2   :  { %v804_v9 = vadd.f32 %v1163_v7, %v803_v8  ;;  %v1349_v10 = vpop.f32.mrb[9].mxu0 }
 0x4c3   :  { %v806_v11 = vpop.f32.mrb[10].mxu0 }
 0x4c4   :  { %vm809_vm6 = vcmp.ge.f32.partialorder %v804_v9, 0.0  ;;  %v810_v13 = vmul.f32 0.01, %v804_v9  ;;  %v1350_v14 = vpop.f32.mrb[11].mxu0 }
 0x4c6   :  { %v811_v16 = vsel %vm809_vm6, %v804_v9, %v810_v13 }
 0x4c7   :  { %v812_v0 = vpack.c.bf16 %v811_v16, %v811_v16 }
 0x4c9   :  { %1023 = vmatmul.mubr.bf16.vlgmr.msra.gmra.mrb[12].mxu1 %v812_v0  ;;  %1368 = vmatmul.mubr.bf16.vlgmr.msra.gmra.mrb[12].mxu0 %v812_v0 }
 0x59c   :  { %v1024_v24 = vpop.f32.mrb[12].mxu1  ;;  %v1065_v25 = vpop.f32.mrb[12].mxu0 }
 0x59d   :  { %v1025_v26 = vadd.f32 %v1024_v24, %v850_v21  ;;  %v1026_v27 = vpop.f32.mrb[13].mxu1  ;;  %v1369_v28 = vpop.f32.mrb[13].mxu0  ;;  %v1066_v29 = vadd.f32 %v1065_v25, %v858_v22 }
 0x59e   :  { %v1027_v30 = vadd.f32 %v1026_v27, %v854_v23  ;;  %v1028_v31 = vpop.f32.mrb[14].mxu1  ;;  %v1068_v32 = vpop.f32.mrb[14].mxu0 }
 0x59f   :  { %v1029_v33 = vpop.f32.mrb[15].mxu1  ;;  %v1370_v34 = vpop.f32.mrb[15].mxu0  ;;  %v1088_v12 = vrot.slane %v1066_v29, %v1727_v15 }
 0x5a0   :  { %v1074_v35 = vcombine.low %v1025_v26, %v1027_v30 }
 0x5a2   :  { %v1081_v36 = vrot.slane %v1074_v35, %v1727_v15 }
 0x5a4   :  { %v1089_v37 = vcombine.low %v1081_v36, %v1088_v12 }
 0x5a6   :  { %1096 = vst.msk [vmem:[#allocation11] sm:$0x3f] %vm1095_vm11, %v1089_v37 }
 0x5a7   :  { %1588 = shalt.err (!%p1585_p2)
}
 0x5a8   :  { %s1589_s18 = scalar_lea.hbm %s1820_s7, 96 }
 0x5a9   :  { %p1590_p3 = scmp.ne.s32.totalorder %s1820_s7, %s1589_s18  ;;  %p1593_p4 = scmp.lt.u32.totalorder %s1589_s18, %s1820_s7 }
 0x5ab   :  { %p1595_p5 = pnand %p1593_p4, %p1590_p3 }
 0x5ad   :  { %1598 = shalt.err (!%p1595_p5)
}
 0x5ae   :  { %1106 = dma.vmem_to_hbm [thread:$0]  %s1104_s6, 96, %s1820_s7, [#allocation4]  }
 0x5af   :  { %1605 = dma.done.wait [#allocation4], 96  }
 0x5b0   :  { %1606 = vsyncadd [#allocation4], 4294967200 }
 0x5b1   :  { %1110 = vsyncpa [#allocation3], 1 }
 0x5b2   :  { %1111 = vsyncpa [#allocation6], 1 }
 0x5b3   :  { %1112 = vsyncpa [#allocation9], 1 }
 0x5b4   :  { %1113 = vsyncpa [#allocation4], 1 }

</bundles_post_ra>
